<compile_context>
chip_gen: v5e
topology: v5e:2x2
jax: 0.10.0
libtpu: 0.0.40
codegen_flags: <defaults>
</compile_context>

<pallas_src>
import jax
import jax.numpy as jnp
from jax.experimental import pallas as pl
from jax.experimental.pallas import tpu as pltpu


def _round_up(x: int, m: int) -> int:
    return ((x + m - 1) // m) * m


def _num_tensorcores() -> int:
    """2 on v7x (two TensorCores per device), 1 on v5e/v6e/unknown."""
    try:
        kind = jax.devices()[0].device_kind.lower()
    except Exception:
        return 1
    if "v7" in kind or "7x" in kind:
        return 2
    return 1


def _vmem_capacity_bytes() -> int:
    try:
        return int(pltpu.get_tpu_info().vmem_capacity_bytes)
    except Exception:
        return 64 * 1024 * 1024  # conservative fallback (v7x physical VMEM)


def _count_kernel(logits_ref, labels_ref, counts_ref, acc_ref):
    """Accumulate per-(class, lane) [tp, #pred, #true] partial counts.

    Blocks are class-major and lane-dense:
      logits_ref: (C, TB, 128)   class c's logits for TB*128 samples
      labels_ref: (1, TB, 128)   int32 labels; -1 marks padding samples
      counts_ref: (1, 3, C, 128) per-split output (written on the last tile)
      acc_ref   : (3, C, 128)    f32 VMEM running accumulator
    """
    i = pl.program_id(1)

    @pl.when(i == 0)
    def _init():
        acc_ref[...] = jnp.zeros_like(acc_ref)

    num_classes = logits_ref.shape[0]

    # Argmax over classes as an unrolled max/select chain over lane-dense
    # (TB, 128) slabs.  Strict '>' keeps the first maximal class on ties,
    # matching torch.argmax.
    best = logits_ref[0]
    best_idx = jnp.zeros(best.shape, dtype=jnp.int32)
    for c in range(1, num_classes):
        v = logits_ref[c]
        gt = v > best
        best = jnp.where(gt, v, best)
        best_idx = jnp.where(gt, c, best_idx)
    # TODO(synk): all-NaN-max rows resolve to the first non-NaN class here,
    # unlike torch.argmax's NaN propagation (edge case only).

    labels = labels_ref[0]            # (TB, 128) int32
    valid = labels >= 0               # padded samples carry label -1

    hit_rows, pred_rows, true_rows = [], [], []
    for c in range(num_classes):
        p = (best_idx == c) & valid
        t = labels == c
        h = p & t
        hit_rows.append(jnp.sum(h.astype(jnp.float32), axis=0, keepdims=True))
        pred_rows.append(jnp.sum(p.astype(jnp.float32), axis=0, keepdims=True))
        true_rows.append(jnp.sum(t.astype(jnp.float32), axis=0, keepdims=True))

    # One full-scratch update per tile (no sub-row masked partial stores).
    acc_ref[...] += jnp.stack([
        jnp.concatenate(hit_rows, axis=0),     # tp        (C, 128)
        jnp.concatenate(pred_rows, axis=0),    # #pred     (C, 128)
        jnp.concatenate(true_rows, axis=0),    # #true     (C, 128)
    ])

    @pl.when(i == pl.num_programs(1) - 1)
    def _flush():
        counts_ref[...] = acc_ref[...][None]


def multi_f1_score(logits: jax.Array, labels: jax.Array, *,
                   block_rows128: int | None = None,
                   num_splits: int | None = None) -> jax.Array:
    """logits: (N, C) float (any dtype); labels: (N,) int. Returns macro F1."""
    assert logits.ndim == 2
    assert labels.ndim == 1
    N, C = logits.shape
    assert labels.shape[0] == N
    itemsize = jnp.dtype(logits.dtype).itemsize

    nr_needed = int(pl.cdiv(N, 128))          # rows of 128 samples

    # --- tile sizing from PADDED VMEM bytes and real HBM bytes per step ------
    vmem_cap = _vmem_capacity_bytes()
    in_row_hbm = 128 * (C * itemsize + 4)     # real HBM bytes per 128 samples
    # In-kernel temporaries estimate per 128 samples (compares widen to f32 on
    # v5e, masks/casts live sequentially per class).
    tmp_row = 128 * (8 * 4 + 4 * 4 * min(C, 8))
    per_row_vmem = 2 * in_row_hbm + tmp_row   # double-buffered inputs + temps

    if block_rows128 is None:
        hbm_target = (8 << 20) if vmem_cap > (96 << 20) else (4 << 20)
        tb_vmem = int(0.6 * min(vmem_cap, 128 << 20)) // per_row_vmem
        tb_hbm = hbm_target // in_row_hbm
        tb = max(8, (min(tb_vmem, tb_hbm) // 8) * 8)
    else:
        tb = max(8, (int(block_rows128) // 8) * 8)

    if nr_needed <= tb:
        tb = nr_needed                        # single tile: block == full extent
        n_tiles = 1
    else:
        n_tiles = int(pl.cdiv(nr_needed, tb))

    # --- split over TensorCores ('parallel' axis; v7x has 2 TCs) -------------
    if num_splits is not None:
        n_splits = max(1, min(int(num_splits), n_tiles))
    else:
        ntc = _num_tensorcores()
        n_splits = ntc if (ntc > 1 and n_tiles >= 2 * ntc) else 1
    tiles_per_split = int(pl.cdiv(n_tiles, n_splits))
    n_tiles = tiles_per_split * n_splits
    nr = n_tiles * tb
    n_pad = nr * 128

    # --- pad + class-major lane-dense layout ----------------------------------
    pad = n_pad - N
    logits_p = jnp.pad(logits, ((0, pad), (0, 0)))
    labels_p = jnp.pad(labels.astype(jnp.int32), ((0, pad),), constant_values=-1)
    logits_t = jnp.transpose(logits_p, (1, 0)).reshape(C, nr, 128)   # (C, nr, 128)
    labels_t = labels_p.reshape(1, nr, 128)                          # (1, nr, 128)

    # --- VMEM limit from padded accounting ------------------------------------
    logits_tile = C * tb * 128 * itemsize
    labels_tile = tb * 128 * 4
    acc_bytes = 3 * _round_up(C, 8) * 128 * 4
    vmem_need = (2 * (logits_tile + labels_tile)    # double-buffered inputs
                 + tb * tmp_row                     # in-kernel temporaries
                 + 3 * acc_bytes                    # scratch + 2 out buffers
                 + (2 << 20))                       # slack
    vmem_limit = int(min(max(32 << 20, vmem_need), (vmem_cap * 3) // 4))

    in_idx = lambda s, i: (0, s * tiles_per_split + i, 0)

    counts = pl.pallas_call(
        _count_kernel,
        out_shape=jax.ShapeDtypeStruct((n_splits, 3, C, 128), jnp.float32),
        grid_spec=pltpu.PrefetchScalarGridSpec(
            num_scalar_prefetch=0,
            grid=(n_splits, tiles_per_split),
            in_specs=[
                pl.BlockSpec((C, tb, 128), in_idx),
                pl.BlockSpec((1, tb, 128), in_idx),
            ],
            out_specs=pl.BlockSpec((1, 3, C, 128), lambda s, i: (s, 0, 0, 0)),
            scratch_shapes=[pltpu.VMEM((3, C, 128), jnp.float32)],
        ),
        compiler_params=pltpu.CompilerParams(
            dimension_semantics=("parallel", "arbitrary"),
            vmem_limit_bytes=vmem_limit,
        ),
        cost_estimate=pl.CostEstimate(
            flops=int(n_pad * 10 * C),
            transcendentals=0,
            bytes_accessed=int(n_pad * (C * itemsize + 4)
                               + n_splits * 3 * C * 128 * 4),
        ),
    )(logits_t, labels_t)

    # --- tiny finalize in plain jnp (no second kernel launch) -----------------
    totals = jnp.sum(counts, axis=(0, 3))          # (3, C)
    tp, n_pred, n_true = totals[0], totals[1], totals[2]
    fp = n_pred - tp
    fn = n_true - tp
    eps = jnp.float32(1e-7)
    precision = tp / (tp + fp + eps)
    recall = tp / (tp + fn + eps)
    f1 = 2.0 * precision * recall / (precision + recall + eps)
    return jnp.mean(f1)


def _reference_multi_f1(logits, labels, num_classes):
    # Pure-JAX reference mirroring the PyTorch per-class loop.
    pred_cls = jnp.argmax(logits, axis=1)
    f1s = []
    for c in range(num_classes):
        pred = (pred_cls == c).astype(jnp.float32)
        true = (labels == c).astype(jnp.float32)
        tp = jnp.sum(pred * true)
        fp = jnp.sum(pred * (1.0 - true))
        fn = jnp.sum((1.0 - pred) * true)
        p = tp / (tp + fp + 1e-7)
        r = tp / (tp + fn + 1e-7)
        f1s.append(2.0 * p * r / (p + r + 1e-7))
    return jnp.mean(jnp.stack(f1s))


if __name__ == "__main__":
    key = jax.random.PRNGKey(0)
    k1, k2, k3, k4 = jax.random.split(key, 4)

    # Case 1: single tile, module-like shapes (N=16 samples, C=4 classes).
    N, C = 16, 4
    logits = jax.random.normal(k1, (N, C), dtype=jnp.float32)
    labels = jax.random.randint(k2, (N,), 0, C, dtype=jnp.int32)
    out = multi_f1_score(logits, labels)
    jax.block_until_ready(out)
    ref = _reference_multi_f1(logits, labels, C)
    assert jnp.allclose(out, ref, atol=1e-5), (out, ref)

    # Case 2: multi-tile accumulation + ragged/padded tail + 2-way split axis.
    N2, C2 = 3000, 5
    logits2 = jax.random.normal(k3, (N2, C2), dtype=jnp.float32)
    labels2 = jax.random.randint(k4, (N2,), 0, C2, dtype=jnp.int32)
    out2 = multi_f1_score(logits2, labels2, block_rows128=8, num_splits=2)
    jax.block_until_ready(out2)
    ref2 = _reference_multi_f1(logits2, labels2, C2)
    assert jnp.allclose(out2, ref2, atol=1e-5), (out2, ref2)

    print("KERNEL_OK")
</pallas_src>

<mosaic_0001>
module attributes {stable_mosaic.version = 11 : i64} {
  func.func @_count_kernel(%arg0: i32, %arg1: i32, %arg2: memref<4x1x128xf32, #tpu.memory_space<vmem>>, %arg3: memref<1x1x128xi32, #tpu.memory_space<vmem>>, %arg4: memref<1x3x4x128xf32, #tpu.memory_space<vmem>>, %arg5: memref<3x4x128xf32, #tpu.memory_space<vmem>>) attributes {dimension_semantics = [#tpu.dimension_semantics<parallel>, #tpu.dimension_semantics<arbitrary>], iteration_bounds = array<i64: 1, 1>, scalar_prefetch = 0 : i64, scratch_operands = 1 : i64, tpu.core_type = #tpu.core_type<tc>, window_params = [{transform_indices = @transform_0, window_bounds = array<i64: 4, 1, 128>}, {transform_indices = @transform_1, window_bounds = array<i64: 1, 1, 128>}, {transform_indices = @transform_2, window_bounds = array<i64: 1, 3, 4, 128>}]} {
    %c0_i32 = arith.constant 0 : i32
    %0 = arith.cmpi eq, %arg1, %c0_i32 : i32
    %1 = arith.extui %0 : i1 to i32
    %c0_i32_0 = arith.constant 0 : i32
    %2 = arith.cmpi ne, %1, %c0_i32_0 : i32
    scf.if %2 {
      %cst_41 = arith.constant 0.000000e+00 : f32
      %112 = vector.broadcast %cst_41 : f32 to vector<3x4x128xf32>
      %c0_42 = arith.constant 0 : index
      %c0_43 = arith.constant 0 : index
      %c0_44 = arith.constant 0 : index
      %113 = vector.load %arg5[%c0_42, %c0_43, %c0_44] : memref<3x4x128xf32, #tpu.memory_space<vmem>>, vector<3x4x128xf32>
      tpu.vector_store %arg5[%c0_42, %c0_43, %c0_44], %112 {strides = array<i32>} : memref<3x4x128xf32, #tpu.memory_space<vmem>>, vector<3x4x128xf32>,
    } else {
    }
    %c0 = arith.constant 0 : index
    %c0_1 = arith.constant 0 : index
    %c0_2 = arith.constant 0 : index
    %3 = vector.load %arg2[%c0, %c0_1, %c0_2] : memref<4x1x128xf32, #tpu.memory_space<vmem>>, vector<1x1x128xf32>
    %4 = vector.shape_cast %3 : vector<1x1x128xf32> to vector<1x128xf32>
    %c0_i32_3 = arith.constant 0 : i32
    %5 = vector.broadcast %c0_i32_3 : i32 to vector<1x128xi32>
    %c1 = arith.constant 1 : index
    %c0_4 = arith.constant 0 : index
    %c0_5 = arith.constant 0 : index
    %6 = vector.load %arg2[%c1, %c0_4, %c0_5] : memref<4x1x128xf32, #tpu.memory_space<vmem>>, vector<1x1x128xf32>
    %7 = vector.shape_cast %6 : vector<1x1x128xf32> to vector<1x128xf32>
    %8 = arith.cmpf ogt, %7, %4 : vector<1x128xf32>
    %9 = arith.select %8, %7, %4 : vector<1x128xi1>, vector<1x128xf32>
    %c1_i32 = arith.constant 1 : i32
    %10 = vector.broadcast %c1_i32 : i32 to vector<1x128xi32>
    %11 = arith.select %8, %10, %5 : vector<1x128xi1>, vector<1x128xi32>
    %c2 = arith.constant 2 : index
    %c0_6 = arith.constant 0 : index
    %c0_7 = arith.constant 0 : index
    %12 = vector.load %arg2[%c2, %c0_6, %c0_7] : memref<4x1x128xf32, #tpu.memory_space<vmem>>, vector<1x1x128xf32>
    %13 = vector.shape_cast %12 : vector<1x1x128xf32> to vector<1x128xf32>
    %14 = arith.cmpf ogt, %13, %9 : vector<1x128xf32>
    %15 = arith.select %14, %13, %9 : vector<1x128xi1>, vector<1x128xf32>
    %c2_i32 = arith.constant 2 : i32
    %16 = vector.broadcast %c2_i32 : i32 to vector<1x128xi32>
    %17 = arith.select %14, %16, %11 : vector<1x128xi1>, vector<1x128xi32>
    %c3 = arith.constant 3 : index
    %c0_8 = arith.constant 0 : index
    %c0_9 = arith.constant 0 : index
    %18 = vector.load %arg2[%c3, %c0_8, %c0_9] : memref<4x1x128xf32, #tpu.memory_space<vmem>>, vector<1x1x128xf32>
    %19 = vector.shape_cast %18 : vector<1x1x128xf32> to vector<1x128xf32>
    %20 = arith.cmpf ogt, %19, %15 : vector<1x128xf32>
    %c3_i32 = arith.constant 3 : i32
    %21 = vector.broadcast %c3_i32 : i32 to vector<1x128xi32>
    %22 = arith.select %20, %21, %17 : vector<1x128xi1>, vector<1x128xi32>
    %c0_10 = arith.constant 0 : index
    %c0_11 = arith.constant 0 : index
    %c0_12 = arith.constant 0 : index
    %23 = vector.load %arg3[%c0_10, %c0_11, %c0_12] : memref<1x1x128xi32, #tpu.memory_space<vmem>>, vector<1x1x128xi32>
    %24 = vector.shape_cast %23 : vector<1x1x128xi32> to vector<1x128xi32>
    %c0_i32_13 = arith.constant 0 : i32
    %25 = vector.broadcast %c0_i32_13 : i32 to vector<1x128xi32>
    %26 = arith.cmpi sge, %24, %25 : vector<1x128xi32>
    %c0_i32_14 = arith.constant 0 : i32
    %27 = vector.broadcast %c0_i32_14 : i32 to vector<1x128xi32>
    %28 = arith.cmpi eq, %22, %27 : vector<1x128xi32>
    %29 = arith.andi %28, %26 : vector<1x128xi1>
    %c0_i32_15 = arith.constant 0 : i32
    %30 = vector.broadcast %c0_i32_15 : i32 to vector<1x128xi32>
    %31 = arith.cmpi eq, %24, %30 : vector<1x128xi32>
    %32 = arith.andi %29, %31 : vector<1x128xi1>
    %33 = arith.extui %32 : vector<1x128xi1> to vector<1x128xi32>
    %34 = arith.sitofp %33 : vector<1x128xi32> to vector<1x128xf32>
    %cst = arith.constant dense<0.000000e+00> : vector<128xf32>
    %35 = vector.multi_reduction <add>, %34, %cst [0] : vector<1x128xf32> to vector<128xf32>
    %36 = vector.shape_cast %35 : vector<128xf32> to vector<1x128xf32>
    %37 = arith.extui %29 : vector<1x128xi1> to vector<1x128xi32>
    %38 = arith.sitofp %37 : vector<1x128xi32> to vector<1x128xf32>
    %cst_16 = arith.constant dense<0.000000e+00> : vector<128xf32>
    %39 = vector.multi_reduction <add>, %38, %cst_16 [0] : vector<1x128xf32> to vector<128xf32>
    %40 = vector.shape_cast %39 : vector<128xf32> to vector<1x128xf32>
    %41 = arith.extui %31 : vector<1x128xi1> to vector<1x128xi32>
    %42 = arith.sitofp %41 : vector<1x128xi32> to vector<1x128xf32>
    %cst_17 = arith.constant dense<0.000000e+00> : vector<128xf32>
    %43 = vector.multi_reduction <add>, %42, %cst_17 [0] : vector<1x128xf32> to vector<128xf32>
    %44 = vector.shape_cast %43 : vector<128xf32> to vector<1x128xf32>
    %c1_i32_18 = arith.constant 1 : i32
    %45 = vector.broadcast %c1_i32_18 : i32 to vector<1x128xi32>
    %46 = arith.cmpi eq, %22, %45 : vector<1x128xi32>
    %47 = arith.andi %46, %26 : vector<1x128xi1>
    %c1_i32_19 = arith.constant 1 : i32
    %48 = vector.broadcast %c1_i32_19 : i32 to vector<1x128xi32>
    %49 = arith.cmpi eq, %24, %48 : vector<1x128xi32>
    %50 = arith.andi %47, %49 : vector<1x128xi1>
    %51 = arith.extui %50 : vector<1x128xi1> to vector<1x128xi32>
    %52 = arith.sitofp %51 : vector<1x128xi32> to vector<1x128xf32>
    %cst_20 = arith.constant dense<0.000000e+00> : vector<128xf32>
    %53 = vector.multi_reduction <add>, %52, %cst_20 [0] : vector<1x128xf32> to vector<128xf32>
    %54 = vector.shape_cast %53 : vector<128xf32> to vector<1x128xf32>
    %55 = arith.extui %47 : vector<1x128xi1> to vector<1x128xi32>
    %56 = arith.sitofp %55 : vector<1x128xi32> to vector<1x128xf32>
    %cst_21 = arith.constant dense<0.000000e+00> : vector<128xf32>
    %57 = vector.multi_reduction <add>, %56, %cst_21 [0] : vector<1x128xf32> to vector<128xf32>
    %58 = vector.shape_cast %57 : vector<128xf32> to vector<1x128xf32>
    %59 = arith.extui %49 : vector<1x128xi1> to vector<1x128xi32>
    %60 = arith.sitofp %59 : vector<1x128xi32> to vector<1x128xf32>
    %cst_22 = arith.constant dense<0.000000e+00> : vector<128xf32>
    %61 = vector.multi_reduction <add>, %60, %cst_22 [0] : vector<1x128xf32> to vector<128xf32>
    %62 = vector.shape_cast %61 : vector<128xf32> to vector<1x128xf32>
    %c2_i32_23 = arith.constant 2 : i32
    %63 = vector.broadcast %c2_i32_23 : i32 to vector<1x128xi32>
    %64 = arith.cmpi eq, %22, %63 : vector<1x128xi32>
    %65 = arith.andi %64, %26 : vector<1x128xi1>
    %c2_i32_24 = arith.constant 2 : i32
    %66 = vector.broadcast %c2_i32_24 : i32 to vector<1x128xi32>
    %67 = arith.cmpi eq, %24, %66 : vector<1x128xi32>
    %68 = arith.andi %65, %67 : vector<1x128xi1>
    %69 = arith.extui %68 : vector<1x128xi1> to vector<1x128xi32>
    %70 = arith.sitofp %69 : vector<1x128xi32> to vector<1x128xf32>
    %cst_25 = arith.constant dense<0.000000e+00> : vector<128xf32>
    %71 = vector.multi_reduction <add>, %70, %cst_25 [0] : vector<1x128xf32> to vector<128xf32>
    %72 = vector.shape_cast %71 : vector<128xf32> to vector<1x128xf32>
    %73 = arith.extui %65 : vector<1x128xi1> to vector<1x128xi32>
    %74 = arith.sitofp %73 : vector<1x128xi32> to vector<1x128xf32>
    %cst_26 = arith.constant dense<0.000000e+00> : vector<128xf32>
    %75 = vector.multi_reduction <add>, %74, %cst_26 [0] : vector<1x128xf32> to vector<128xf32>
    %76 = vector.shape_cast %75 : vector<128xf32> to vector<1x128xf32>
    %77 = arith.extui %67 : vector<1x128xi1> to vector<1x128xi32>
    %78 = arith.sitofp %77 : vector<1x128xi32> to vector<1x128xf32>
    %cst_27 = arith.constant dense<0.000000e+00> : vector<128xf32>
    %79 = vector.multi_reduction <add>, %78, %cst_27 [0] : vector<1x128xf32> to vector<128xf32>
    %80 = vector.shape_cast %79 : vector<128xf32> to vector<1x128xf32>
    %c3_i32_28 = arith.constant 3 : i32
    %81 = vector.broadcast %c3_i32_28 : i32 to vector<1x128xi32>
    %82 = arith.cmpi eq, %22, %81 : vector<1x128xi32>
    %83 = arith.andi %82, %26 : vector<1x128xi1>
    %c3_i32_29 = arith.constant 3 : i32
    %84 = vector.broadcast %c3_i32_29 : i32 to vector<1x128xi32>
    %85 = arith.cmpi eq, %24, %84 : vector<1x128xi32>
    %86 = arith.andi %83, %85 : vector<1x128xi1>
    %87 = arith.extui %86 : vector<1x128xi1> to vector<1x128xi32>
    %88 = arith.sitofp %87 : vector<1x128xi32> to vector<1x128xf32>
    %cst_30 = arith.constant dense<0.000000e+00> : vector<128xf32>
    %89 = vector.multi_reduction <add>, %88, %cst_30 [0] : vector<1x128xf32> to vector<128xf32>
    %90 = vector.shape_cast %89 : vector<128xf32> to vector<1x128xf32>
    %91 = arith.extui %83 : vector<1x128xi1> to vector<1x128xi32>
    %92 = arith.sitofp %91 : vector<1x128xi32> to vector<1x128xf32>
    %cst_31 = arith.constant dense<0.000000e+00> : vector<128xf32>
    %93 = vector.multi_reduction <add>, %92, %cst_31 [0] : vector<1x128xf32> to vector<128xf32>
    %94 = vector.shape_cast %93 : vector<128xf32> to vector<1x128xf32>
    %95 = arith.extui %85 : vector<1x128xi1> to vector<1x128xi32>
    %96 = arith.sitofp %95 : vector<1x128xi32> to vector<1x128xf32>
    %cst_32 = arith.constant dense<0.000000e+00> : vector<128xf32>
    %97 = vector.multi_reduction <add>, %96, %cst_32 [0] : vector<1x128xf32> to vector<128xf32>
    %98 = vector.shape_cast %97 : vector<128xf32> to vector<1x128xf32>
    %c0_33 = arith.constant 0 : index
    %c0_34 = arith.constant 0 : index
    %c0_35 = arith.constant 0 : index
    %99 = vector.load %arg5[%c0_33, %c0_34, %c0_35] : memref<3x4x128xf32, #tpu.memory_space<vmem>>, vector<3x4x128xf32>
    %100 = tpu.concatenate %36, %54, %72, %90 in 0 : vector<1x128xf32>, vector<1x128xf32>, vector<1x128xf32>, vector<1x128xf32> -> vector<4x128xf32>
    %101 = tpu.concatenate %40, %58, %76, %94 in 0 : vector<1x128xf32>, vector<1x128xf32>, vector<1x128xf32>, vector<1x128xf32> -> vector<4x128xf32>
    %102 = tpu.concatenate %44, %62, %80, %98 in 0 : vector<1x128xf32>, vector<1x128xf32>, vector<1x128xf32>, vector<1x128xf32> -> vector<4x128xf32>
    %103 = vector.shape_cast %100 : vector<4x128xf32> to vector<1x4x128xf32>
    %104 = vector.shape_cast %101 : vector<4x128xf32> to vector<1x4x128xf32>
    %105 = vector.shape_cast %102 : vector<4x128xf32> to vector<1x4x128xf32>
    %106 = tpu.concatenate %103, %104, %105 in 0 : vector<1x4x128xf32>, vector<1x4x128xf32>, vector<1x4x128xf32> -> vector<3x4x128xf32>
    %107 = arith.addf %99, %106 : vector<3x4x128xf32>
    %c0_36 = arith.constant 0 : index
    %c0_37 = arith.constant 0 : index
    %c0_38 = arith.constant 0 : index
    %108 = vector.load %arg5[%c0_36, %c0_37, %c0_38] : memref<3x4x128xf32, #tpu.memory_space<vmem>>, vector<3x4x128xf32>
    tpu.vector_store %arg5[%c0_36, %c0_37, %c0_38], %107 {strides = array<i32>} : memref<3x4x128xf32, #tpu.memory_space<vmem>>, vector<3x4x128xf32>,
    %c0_i32_39 = arith.constant 0 : i32
    %109 = arith.cmpi eq, %arg1, %c0_i32_39 : i32
    %110 = arith.extui %109 : i1 to i32
    %c0_i32_40 = arith.constant 0 : i32
    %111 = arith.cmpi ne, %110, %c0_i32_40 : i32
    scf.if %111 {
      %c0_41 = arith.constant 0 : index
      %c0_42 = arith.constant 0 : index
      %c0_43 = arith.constant 0 : index
      %112 = vector.load %arg5[%c0_41, %c0_42, %c0_43] : memref<3x4x128xf32, #tpu.memory_space<vmem>>, vector<3x4x128xf32>
      %113 = vector.shape_cast %112 : vector<3x4x128xf32> to vector<1x3x4x128xf32>
      %c0_44 = arith.constant 0 : index
      %c0_45 = arith.constant 0 : index
      %c0_46 = arith.constant 0 : index
      %c0_47 = arith.constant 0 : index
      %114 = vector.load %arg4[%c0_44, %c0_45, %c0_46, %c0_47] : memref<1x3x4x128xf32, #tpu.memory_space<vmem>>, vector<1x3x4x128xf32>
      tpu.vector_store %arg4[%c0_44, %c0_45, %c0_46, %c0_47], %113 {strides = array<i32>} : memref<1x3x4x128xf32, #tpu.memory_space<vmem>>, vector<1x3x4x128xf32>,
    } else {
    }
    return
  }
  func.func @transform_0(%arg0: i32, %arg1: i32) -> (i32, i32, i32) {
    %c1_i32 = arith.constant 1 : i32
    %0 = arith.muli %arg0, %c1_i32 : i32
    %1 = arith.addi %0, %arg1 : i32
    %c0_i32 = arith.constant 0 : i32
    %c0_i32_0 = arith.constant 0 : i32
    %c0_i32_1 = arith.constant 0 : i32
    return %c0_i32, %1, %c0_i32_0 : i32, i32, i32
  }
  func.func @transform_1(%arg0: i32, %arg1: i32) -> (i32, i32, i32) {
    %c1_i32 = arith.constant 1 : i32
    %0 = arith.muli %arg0, %c1_i32 : i32
    %1 = arith.addi %0, %arg1 : i32
    %c0_i32 = arith.constant 0 : i32
    %c0_i32_0 = arith.constant 0 : i32
    %c0_i32_1 = arith.constant 0 : i32
    return %c0_i32, %1, %c0_i32_0 : i32, i32, i32
  }
  func.func @transform_2(%arg0: i32, %arg1: i32) -> (i32, i32, i32, i32) {
    %c0_i32 = arith.constant 0 : i32
    %c0_i32_0 = arith.constant 0 : i32
    %c0_i32_1 = arith.constant 0 : i32
    %c0_i32_2 = arith.constant 0 : i32
    return %arg0, %c0_i32, %c0_i32_0, %c0_i32_1 : i32, i32, i32, i32
  }
}

</mosaic_0001>

<bundles_post_ra>
// kernel: tpu_custom_call.1
= control target key start
LH: loop header
LB: loop body
LE: loop exit
PB: predicated region body
PF: predicated region fallthrough
CT: control target
= control target key end

     0   :  { %7 = vsyncpa [#allocation4], 0  ;;  %s369_s0 = inlined_call_operand.hbm [shape: f32[4,1,128], index: 0, kind: input, shape index: {}]   ;;  %s370_s1 = inlined_call_operand.hbm [shape: s32[1,1,128], index: 1, kind: input, shape index: {}]   ;;  %s371_s2 = inlined_call_operand.hbm [shape: f32[1,3,4,128], index: 2, kind: output, shape index: {}]  }
   0x1   :  { %8 = vsyncpa [#allocation7], 0 }
   0x2   :  { %9 = vsyncpa [#allocation5], 0  ;;  %s16_s11 = sshll.u32 %s369_s0, 4  ;;  %s300_s12 = smov [#allocation3]   ;;  %s17_s11 = int_to_ptr.hbm [resolvable:$true] %s16_s11 }
   0x3   :  { %s18_s13 = sshll.u32 %s300_s12, 4  ;;  %s32_s16 = sshll.u32 %s370_s1, 4  ;;  %s19_s13 = int_to_ptr.vmem [resolvable:$true] %s18_s13  ;;  %s33_s16 = int_to_ptr.hbm [resolvable:$true] %s32_s16 }
   0x4   :  { %s301_s17 = smov 16   ;;  %s302_s18 = smov 1  }
   0x5   :  { %24 = dma.hbm_to_vmem [thread:$0]  %s17_s11, 64, %s19_s13, [#allocation4], %s301_s17, %s301_s17, %s302_s18  }
   0x6   :  { %s303_s19 = smov [#allocation6]  }
   0x7   :  { %s34_s20 = sshll.u32 %s303_s19, 4  ;;  %s35_s20 = int_to_ptr.vmem [resolvable:$true] %s34_s20 }
   0x8   :  { %37 = dma.hbm_to_vmem [thread:$0]  %s33_s16, 16, %s35_s20, [#allocation7]  }
   0x9   :  { %294 = dma.done.wait [#allocation4], 64  }
   0xa   :  { %295 = vsyncadd [#allocation4], 4294967232 }
   0xb   :  { %296 = dma.done.wait [#allocation7], 16  }
   0xc   :  { %297 = vsyncadd [#allocation7], 4294967280  ;;  %v304_v0 = vmov 0.0   ;;  %v55_v1 = vld [vmem:[#allocation3] sm:$0x1]  ;;  %v305_v6 = vmov 0  }
   0xd   :  { %52 = vst [vmem:[#allocation2] sm:$0xf] %v304_v0  ;;  %v57_v2 = vld [vmem:[#allocation3 + $0x1] sm:$0x1]  ;;  %v62_v3 = vld [vmem:[#allocation3 + $0x2] sm:$0x1] }
   0xe   :  { %53 = vst [vmem:[#allocation2 + $0x4] sm:$0xf] %v304_v0  ;;  %vm58_vm0 = vcmp.gt.f32.partialorder %v57_v2, %v55_v1  ;;  %v70_v4 = vld [vmem:[#allocation6] sm:$0x1]  ;;  %v67_v8 = vld [vmem:[#allocation3 + $0x3] sm:$0x1] }
   0xf   :  { %54 = vst [vmem:[#allocation2 + $0x8] sm:$0xf] %v304_v0  ;;  %v59_v5 = vsel %vm58_vm0, %v57_v2, %v55_v1  ;;  %v60_v7 = vsel %vm58_vm0, 1, %v305_v6  ;;  %vm74_vm1 = vcmp.eq.s32.totalorder %v70_v4, 0  ;;  %vm136_vm2 = vcmask 1040384   ;;  %s306_s0 = smov [#allocation8]  }
  0x10   :  { %vm63_vm3 = vcmp.gt.f32.partialorder %v62_v3, %v59_v5  ;;  %vm87_vm4 = vcmp.eq.s32.totalorder %v70_v4, 1  ;;  %vm100_vm5 = vcmp.eq.s32.totalorder %v70_v4, 2  ;;  %vm113_vm6 = vcmp.eq.s32.totalorder %v70_v4, 3  ;;  %s185_s1 = sshll.u32 %s306_s0, 4  ;;  %s187_s23 = sshll.u32 %s371_s2, 4  ;;  %s186_s1 = int_to_ptr.vmem [resolvable:$true] %s185_s1  ;;  %s188_s23 = int_to_ptr.hbm [resolvable:$true] %s187_s23 }
  0x11   :  { %v64_v9 = vsel %vm63_vm3, %v62_v3, %v59_v5  ;;  %v65_v10 = vsel %vm63_vm3, 2, %v60_v7  ;;  %v203_v11 = vsel %vm74_vm1, 1.0, %v304_v0  ;;  %v206_v12 = vsel %vm87_vm4, 1.0, %v304_v0  ;;  %s307_s24 = smov 64   ;;  %s308_s25 = smov 4  }
  0x12   :  { %vm68_vm7 = vcmp.gt.f32.partialorder %v67_v8, %v64_v9  ;;  %v209_v13 = vsel %vm100_vm5, 1.0, %v304_v0  ;;  %v212_v14 = vsel %vm113_vm6, 1.0, %v304_v0  ;;  %v155_v15 = vperm.slane %v206_v12, 0 }
  0x13   :  { %v69_v16 = vsel %vm68_vm7, 3, %v65_v10  ;;  %vm138_vm8 = vcmask 1041408   ;;  %v158_v17 = vperm.slane %v209_v13, 0  ;;  %v161_v18 = vperm.slane %v212_v14, 0 }
  0x14   :  { %vm71_vm9 = vcmp.ge.s32.totalorder %v70_v4, 0  ;;  %vm72_vm10 = vcmp.eq.s32.totalorder %v69_v16, 0  ;;  %vm85_vm11 = vcmp.eq.s32.totalorder %v69_v16, 1  ;;  %vm140_vm12 = vcmask 1042432   ;;  %v124_v41 = vld [vmem:[#allocation2] sm:$0xf] }
  0x15   :  { %vm73_vm13 = vmand %vm72_vm10, %vm71_vm9  ;;  %v163_v20 = vsel %vm136_vm2, %v203_v11, %v155_v15  ;;  %vm98_vm15 = vcmp.eq.s32.totalorder %v69_v16, 2  ;;  %vm111_vm7 = vcmp.eq.s32.totalorder %v69_v16, 3  ;;  %v125_v38 = vld [vmem:[#allocation2 + $0x4] sm:$0xf] }
  0x16   :  { %v126_v19 = vld [vmem:[#allocation2 + $0x8] sm:$0xf]  ;;  %vm75_vm14 = vmand %vm73_vm13, %vm74_vm1  ;;  %v164_v21 = vsel %vm138_vm8, %v163_v20, %v158_v17  ;;  %v202_v23 = vsel %vm73_vm13, 1.0, %v304_v0 }
  0x17   :  { %vm86_vm0 = vmand %vm85_vm11, %vm71_vm9  ;;  %v165_v22 = vsel %vm140_vm12, %v164_v21, %v161_v18  ;;  %v201_v26 = vsel %vm75_vm14, 1.0, %v304_v0 }
  0x18   :  { %vm88_vm3 = vmand %vm86_vm0, %vm87_vm4  ;;  %v205_v24 = vsel %vm86_vm0, 1.0, %v304_v0  ;;  %v168_v25 = vadd.f32 %v165_v22, %v126_v19 }
  0x19   :  { %v204_v27 = vsel %vm88_vm3, 1.0, %v304_v0  ;;  %vm99_vm1 = vmand %vm98_vm15, %vm71_vm9  ;;  %v143_v28 = vperm.slane %v205_v24, 0 }
  0x1a   :  { %vm101_vm10 = vmand %vm99_vm1, %vm100_vm5  ;;  %v128_v29 = vperm.slane %v204_v27, 0  ;;  %v208_v30 = vsel %vm99_vm1, 1.0, %v304_v0  ;;  %171 = vst [vmem:[#allocation2 + $0x8] sm:$0xf] %v168_v25 }
  0x1b   :  { %v207_v31 = vsel %vm101_vm10, 1.0, %v304_v0  ;;  %vm112_vm4 = vmand %vm111_vm7, %vm71_vm9  ;;  %v146_v32 = vperm.slane %v208_v30, 0  ;;  %v151_v33 = vsel %vm136_vm2, %v202_v23, %v143_v28 }
  0x1c   :  { %vm114_vm11 = vmand %vm112_vm4, %vm113_vm6  ;;  %v131_v34 = vperm.slane %v207_v31, 0  ;;  %v137_v35 = vsel %vm136_vm2, %v201_v26, %v128_v29  ;;  %v211_v36 = vsel %vm112_vm4, 1.0, %v304_v0 }
  0x1d   :  { %v210_v37 = vsel %vm114_vm11, 1.0, %v304_v0  ;;  %v149_v39 = vperm.slane %v211_v36, 0  ;;  %v152_v40 = vsel %vm138_vm8, %v151_v33, %v146_v32 }
  0x1e   :  { %v134_v42 = vperm.slane %v210_v37, 0  ;;  %v139_v43 = vsel %vm138_vm8, %v137_v35, %v131_v34 }
  0x1f   :  { %v153_v44 = vsel %vm140_vm12, %v152_v40, %v149_v39 }
  0x20   :  { %v141_v45 = vsel %vm140_vm12, %v139_v43, %v134_v42  ;;  %v167_v46 = vadd.f32 %v153_v44, %v125_v38 }
  0x21   :  { %v166_v47 = vadd.f32 %v141_v45, %v124_v41  ;;  %v177_v48 = vld [vmem:[#allocation2 + $0x8] sm:$0xf] }
  0x22   :  { %170 = vst [vmem:[#allocation2 + $0x4] sm:$0xf] %v167_v46 }
  0x23   :  { %169 = vst [vmem:[#allocation2] sm:$0xf] %v166_v47 }
  0x24   :  { %180 = vst [vmem:[#allocation8 + $0x8] sm:$0xf] %v177_v48 }
  0x2a   :  { %v175_v49 = vld [vmem:[#allocation2] sm:$0xff]  }
  0x2b   :  { %178 = vst [vmem:[#allocation8] sm:$0xff] %v175_v49  }
  0x2c   :  { %193 = dma.vmem_to_hbm [thread:$0]  %s186_s1, 192, %s188_s23, [#allocation5], %s307_s24, %s307_s24, %s308_s25  }
  0x2d   :  { %298 = dma.done.wait [#allocation5], 192  }
  0x2e   :  { %299 = vsyncadd [#allocation5], 4294967104 }
  0x2f   :  { %198 = vsyncpa [#allocation4], 1 }
  0x30   :  { %199 = vsyncpa [#allocation7], 1 }
  0x31   :  { %200 = vsyncpa [#allocation5], 1 }

</bundles_post_ra>
